<compile_context>
chip_gen: v5e
topology: v5e:2x2
jax: 0.10.0
libtpu: 0.0.40
codegen_flags: <defaults>
</compile_context>

<pallas_src>
import functools

import jax
import jax.numpy as jnp
import numpy as np
from jax import lax
from jax.experimental import pallas as pl
from jax.experimental.pallas import tpu as pltpu


def _round_up(x, m):
    return (x + m - 1) // m * m


def _vmem_budget_bytes():
    """Per-input-buffer DMA block budget (BlockSpec double-buffers it)."""
    try:
        kind = jax.devices()[0].device_kind.lower()
    except Exception:  # no device info (e.g. interpret mode) -> conservative
        kind = ""
    if "v4" in kind or "v5" in kind:
        return 6 * 1024 * 1024      # 16 MiB scoped-VMEM default on v4/v5e
    return 12 * 1024 * 1024         # 32 MiB scoped default on v6e/v7x (v7x: 64 MiB phys)


def _pick_block_b(b, t, itemsize, budget_bytes):
    packing = max(4 // itemsize, 1)                        # f32: 1, bf16: 2
    bytes_per_lane = _round_up(t, 8 * packing) * itemsize  # VMEM rows pad to 8*packing
    budget_lanes = max(budget_bytes // bytes_per_lane, 128) // 128 * 128
    # Keep >= ~4 blocks when B is large (v7x: 2 TCs share the "parallel" axis),
    # but never shrink a block below 32K lanes (grid-step overhead floor).
    balanced_lanes = max(_round_up(pl.cdiv(b, 4), 128), 32 * 1024)
    return max(128, min(budget_lanes, balanced_lanes, _round_up(b, 128)))


def _grad_smooth_kernel(x_ref, decay_ref, o_ref, *, true_b, clamp_val, chunk, needs_mask):
    """One batch tile.

    x_ref:     (T, block_b)   VMEM, native input dtype (cast to f32 per chunk)
    decay_ref: (T-1, 1)       VMEM f32, resident across the whole grid
    o_ref:     (1, T-1, 128)  VMEM f32, lane-dense per-block partial sums
    """
    t, block_b = x_ref.shape
    n_chunks = block_b // chunk
    block_start = pl.program_id(0) * block_b

    # Hoisted out of the chunk loop (JAX does not CSE broadcast_in_dim / iota).
    decay_b = jnp.broadcast_to(decay_ref[...], (t - 1, chunk))
    lane_iota = lax.broadcasted_iota(jnp.int32, (1, chunk), 1) if needs_mask else None

    def body(ci, acc):
        c = pl.multiple_of(ci * chunk, chunk)
        # Ref-level temporal slices: plain offset vlds, no value-level sublane shifts.
        hi = x_ref[pl.ds(1, t - 1), pl.ds(c, chunk)].astype(jnp.float32)
        lo = x_ref[pl.ds(0, t - 1), pl.ds(c, chunk)].astype(jnp.float32)
        g = jnp.abs(hi - lo) - decay_b
        g = jnp.clip(g, 0.0, clamp_val)                    # torch.clamp(min=0, max=clampVal)
        if needs_mask:                                     # static: padding lanes may exist
            limit = true_b - block_start - c               # scalar; lane-only compare,
            g = jnp.where(lane_iota < limit, g, 0.0)       # broadcast across T-1 sublanes
        # Fold 128-lane groups into the accumulator: aligned value slices -> pure vadds.
        for j in range(chunk // 128):
            acc = acc + g[:, j * 128:(j + 1) * 128]
        return acc

    acc = lax.fori_loop(0, n_chunks, body, jnp.zeros((t - 1, 128), jnp.float32))
    o_ref[...] = acc[None]


def gradient_smooth_loss_time_major(x_tm, decay, clamp_val=0.25, block_b=None, chunk=1024):
    """x_tm: (future+1, B), any float dtype; decay: (future,). Returns scalar f32."""
    t, b = x_tm.shape
    assert decay.shape[0] == t - 1, "decay length must equal future = T - 1"
    itemsize = jnp.dtype(x_tm.dtype).itemsize

    if block_b is None:
        block_b = _pick_block_b(b, t, itemsize, _vmem_budget_bytes())
    block_b = max(128, min(_round_up(block_b, 128), _round_up(b, 128)))
    chunk = max(128, (min(chunk, block_b) // 128) * 128)
    block_b = _round_up(block_b, chunk)            # inner chunk loop tiles the block exactly
    num_blocks = pl.cdiv(b, block_b)               # no wrapper pad: ragged last block is
    needs_mask = (b % block_b) != 0                # masked in-kernel

    decay_col = decay.reshape(t - 1, 1).astype(jnp.float32)

    partials = pl.pallas_call(
        functools.partial(_grad_smooth_kernel, true_b=b, clamp_val=float(clamp_val),
                          chunk=chunk, needs_mask=needs_mask),
        grid=(num_blocks,),
        out_shape=jax.ShapeDtypeStruct((num_blocks, t - 1, 128), jnp.float32),
        in_specs=[
            pl.BlockSpec((t, block_b), lambda i: (0, i)),      # streamed batch tiles
            pl.BlockSpec((t - 1, 1), lambda i: (0, 0)),        # decay pinned in VMEM
        ],
        out_specs=pl.BlockSpec((1, t - 1, 128), lambda i: (i, 0, 0)),  # lane-dense partials
        compiler_params=pltpu.CompilerParams(
            dimension_semantics=("parallel",)),                # v7x: shard blocks over 2 TCs
    )(x_tm, decay_col)

    inv_n = jnp.float32(1.0 / (b * (t - 1)))                   # constant multiply, no divide
    return jnp.sum(partials) * inv_n


def gradient_smooth_loss(in_tensor, decay, clamp_val=0.25, block_b=None, chunk=1024):
    """PyTorch-layout entry point: in_tensor (B, future+1), decay (future,).

    NOTE: the `.T` costs an extra XLA HBM pass; large-B callers should keep data
    time-major and call gradient_smooth_loss_time_major directly.
    """
    # TODO(synk): add a layout-native (rows, T) variant to avoid the XLA transpose
    # for strictly (B, T)-layout callers (lane-sparse but single HBM pass).
    return gradient_smooth_loss_time_major(in_tensor.T, decay, clamp_val, block_b, chunk)


def make_decay(ref_grad, future):
    """Deterministic parameter init, mirrors GradientSmoothLoss.__init__."""
    lin = np.linspace(0.0, 1.0, future)
    decay = (0.8 - lin * 0.5) * ref_grad               # __linear_decay * refGrad
    return jnp.asarray(decay, dtype=jnp.float32)


if __name__ == "__main__":
    ref_grad, clamp_val = 0.5, 0.25

    def reference(x, decay):
        d = x[:, 1:] - x[:, :-1]
        return jnp.mean(jnp.clip(jnp.abs(d) - decay[None, :], 0.0, clamp_val))

    future = 16
    decay = make_decay(ref_grad, future)

    # 1) Small shape consistent with the module: future=16 -> 17 time points.
    x1 = jax.random.normal(jax.random.PRNGKey(0), (4, future + 1), jnp.float32)
    loss1 = jax.block_until_ready(gradient_smooth_loss(x1, decay, clamp_val))
    assert jnp.allclose(loss1, reference(x1, decay), atol=1e-6, rtol=1e-5), loss1

    # 2) Multi-block grid + ragged last block (mask path, single chunk per block).
    x2 = jax.random.normal(jax.random.PRNGKey(1), (300, future + 1), jnp.float32)
    loss2 = jax.block_until_ready(gradient_smooth_loss(x2, decay, clamp_val, block_b=128))
    assert jnp.allclose(loss2, reference(x2, decay), atol=1e-5, rtol=1e-5), loss2

    # 3) Multi-chunk inner loop + multi-block + ragged last block.
    x3 = jax.random.normal(jax.random.PRNGKey(2), (3000, future + 1), jnp.float32)
    loss3 = jax.block_until_ready(
        gradient_smooth_loss(x3, decay, clamp_val, block_b=1024, chunk=256))
    assert jnp.allclose(loss3, reference(x3, decay), atol=1e-5, rtol=1e-5), loss3

    # 4) bf16 input streams in native dtype, cast to f32 per chunk inside the kernel.
    x4 = jax.random.normal(jax.random.PRNGKey(3), (257, future + 1), jnp.bfloat16)
    loss4 = jax.block_until_ready(gradient_smooth_loss(x4, decay, clamp_val))
    ref4 = reference(x4.astype(jnp.float32), decay)
    assert jnp.allclose(loss4, ref4, atol=1e-5, rtol=1e-5), loss4

    print("KERNEL_OK")
</pallas_src>

<mosaic_0001>
module attributes {stable_mosaic.version = 11 : i64} {
  func.func @_grad_smooth_kernel(%arg0: i32, %arg1: memref<17x128xf32, #tpu.memory_space<vmem>>, %arg2: memref<16x1xf32, #tpu.memory_space<vmem>>, %arg3: memref<1x16x128xf32, #tpu.memory_space<vmem>>) attributes {dimension_semantics = [#tpu.dimension_semantics<parallel>], iteration_bounds = array<i64: 1>, scalar_prefetch = 0 : i64, scratch_operands = 0 : i64, tpu.core_type = #tpu.core_type<tc>, window_params = [{transform_indices = @transform_0, window_bounds = array<i64: 17, 128>}, {pipeline_mode = #tpu.pipeline_mode<synchronous>, transform_indices = @transform_1, window_bounds = array<i64: 16, 1>}, {transform_indices = @transform_2, window_bounds = array<i64: 1, 16, 128>}]} {
    %c128_i32 = arith.constant 128 : i32
    %0 = arith.muli %arg0, %c128_i32 : i32
    %c0 = arith.constant 0 : index
    %c0_0 = arith.constant 0 : index
    %1 = vector.load %arg2[%c0, %c0_0] : memref<16x1xf32, #tpu.memory_space<vmem>>, vector<16x1xf32>
    %2 = vector.shape_cast %1 : vector<16x1xf32> to vector<16x1xf32>
    %3 = vector.broadcast %2 : vector<16x1xf32> to vector<16x128xf32>
    %4 = tpu.iota {dimensions = array<i32: 1>} : vector<1x128xi32>
    %cst = arith.constant 0.000000e+00 : f32
    %5 = vector.broadcast %cst : f32 to vector<16x128xf32>
    %c0_i32 = arith.constant 0 : i32
    %c128_i32_1 = arith.constant 128 : i32
    %6 = arith.muli %c0_i32, %c128_i32_1 : i32
    %7 = tpu.assume_multiple %6, 128 : i32
    %c1 = arith.constant 1 : index
    %8 = arith.index_cast %7 : i32 to index
    %9 = vector.load %arg1[%c1, %8] : memref<17x128xf32, #tpu.memory_space<vmem>>, vector<16x128xf32>
    %c0_2 = arith.constant 0 : index
    %10 = arith.index_cast %7 : i32 to index
    %11 = vector.load %arg1[%c0_2, %10] : memref<17x128xf32, #tpu.memory_space<vmem>>, vector<16x128xf32>
    %12 = arith.subf %9, %11 : vector<16x128xf32>
    %13 = math.absf %12 : vector<16x128xf32>
    %14 = arith.subf %13, %3 : vector<16x128xf32>
    %cst_3 = arith.constant 0.000000e+00 : f32
    %cst_4 = arith.constant 2.500000e-01 : f32
    %15 = vector.broadcast %cst_3 : f32 to vector<16x128xf32>
    %16 = arith.maximumf %15, %14 : vector<16x128xf32>
    %17 = vector.broadcast %cst_4 : f32 to vector<16x128xf32>
    %18 = arith.minimumf %17, %16 : vector<16x128xf32>
    %c4_i32 = arith.constant 4 : i32
    %19 = arith.subi %c4_i32, %0 : i32
    %20 = arith.subi %19, %7 : i32
    %21 = vector.broadcast %20 : i32 to vector<1x128xi32>
    %22 = arith.cmpi slt, %4, %21 : vector<1x128xi32>
    %cst_5 = arith.constant 0.000000e+00 : f32
    %23 = vector.shape_cast %22 : vector<1x128xi1> to vector<1x128xi1>
    %24 = vector.broadcast %23 : vector<1x128xi1> to vector<16x128xi1>
    %25 = vector.broadcast %cst_5 : f32 to vector<16x128xf32>
    %26 = arith.select %24, %18, %25 : vector<16x128xi1>, vector<16x128xf32>
    %27 = arith.addf %5, %26 : vector<16x128xf32>
    %c1_i32 = arith.constant 1 : i32
    %28 = vector.shape_cast %27 : vector<16x128xf32> to vector<1x16x128xf32>
    %c0_6 = arith.constant 0 : index
    %c0_7 = arith.constant 0 : index
    %c0_8 = arith.constant 0 : index
    %29 = vector.load %arg3[%c0_6, %c0_7, %c0_8] : memref<1x16x128xf32, #tpu.memory_space<vmem>>, vector<1x16x128xf32>
    tpu.vector_store %arg3[%c0_6, %c0_7, %c0_8], %28 {strides = array<i32>} : memref<1x16x128xf32, #tpu.memory_space<vmem>>, vector<1x16x128xf32>,
    return
  }
  func.func @transform_0(%arg0: i32) -> (i32, i32) {
    %c0_i32 = arith.constant 0 : i32
    %c0_i32_0 = arith.constant 0 : i32
    return %c0_i32, %arg0 : i32, i32
  }
  func.func @transform_1(%arg0: i32) -> (i32, i32) {
    %c0_i32 = arith.constant 0 : i32
    %c0_i32_0 = arith.constant 0 : i32
    %c0_i32_1 = arith.constant 0 : i32
    return %c0_i32, %c0_i32_0 : i32, i32
  }
  func.func @transform_2(%arg0: i32) -> (i32, i32, i32) {
    %c0_i32 = arith.constant 0 : i32
    %c0_i32_0 = arith.constant 0 : i32
    %c0_i32_1 = arith.constant 0 : i32
    return %arg0, %c0_i32, %c0_i32_0 : i32, i32, i32
  }
}

</mosaic_0001>

<bundles_post_ra>
// kernel: tpu_custom_call.1
= control target key start
LH: loop header
LB: loop body
LE: loop exit
PB: predicated region body
PF: predicated region fallthrough
CT: control target
= control target key end

     0   :  { %v102_v1 = vmov 0   ;;  %s142_s0 = inlined_call_operand.vmem [shape: f32[17,4], index: 0, kind: input, shape index: {}]   ;;  %s143_s1 = inlined_call_operand.vmem [shape: f32[16,1], index: 1, kind: input, shape index: {}]   ;;  %s144_s2 = inlined_call_operand.hbm [shape: f32[1,16,128], index: 2, kind: output, shape index: {}]  }
   0x1   :  { %v13_v0 = vld [vmem:[%s143_s1] sm:$0xff]  ;;  %75 = vset.pattern.permute.xlu0 %v102_v1 }
   0x2   :  { %7 = vsyncpa [#allocation3], 0  ;;  %17 = vperm.xlu0 %75, %v13_v0   ;;  %v14_v2 = vld [vmem:[%s143_s1 + $0x8] sm:$0xff]  ;;  %v29_v4 = vld [vmem:[%s142_s0] sm:$0xff]  ;;  %v25_v6 = vlaneseq  ;;  %s103_s1 = smov [#allocation2]   ;;  %s59_s24 = sshll.u32 %s144_s2, 4  ;;  %s60_s24 = int_to_ptr.hbm [resolvable:$true] %s59_s24 }
   0x3   :  { %v27_v3 = vld [vmem:[%s142_s0 + $0x1] sm:$0xff]  ;;  %v28_v8 = vld [vmem:[%s142_s0 + $0x9] sm:$0xff]  ;;  %s57_s21 = sshll.u32 %s103_s1, 4  ;;  %s105_s25 = smov 8   ;;  %s58_s21 = int_to_ptr.vmem [resolvable:$true] %s57_s21 }
   0x4   :  { %v31_v5 = vsub.f32 %v27_v3, %v29_v4  ;;  %v30_v9 = vld [vmem:[%s142_s0 + $0x8] sm:$0xff]  ;;  %v26_v10 = vand.u32 127, %v25_v6  ;;  %s104_s0 = smov 128  }
   0x5   :  { %v32_v13 = vsub.f32 %v28_v8, %v30_v9 }
   0x6   :  { %v33_v7 = vand.u32 2147483647, %v31_v5  ;;  %vm44_vm0 = vcmp.lt.s32.totalorder %v26_v10, 4 }
   0x7   :  { %v34_v16 = vand.u32 2147483647, %v32_v13 }
   0xa   :  { %22 = vperm.xlu0 %75, %v14_v2  }
  0x74   :  { %v18_v11 = vpop.permute.xlu0 %17 }
  0x75   :  { %v35_v12 = vsub.f32 %v33_v7, %v18_v11 }
  0x77   :  { %v37_v14 = vmax.f32 %v35_v12, 0.0 }
  0x79   :  { %v39_v15 = vmin.f32 %v37_v14, 0.25 }
  0x7b   :  { %v47_v17 = vsel %vm44_vm0, %v39_v15, 0.0 }
  0x7c   :  { %51 = vst [vmem:[#allocation2] sm:$0xff] %v47_v17  ;;  %v23_v18 = vpop.permute.xlu0 %22 }
  0x7d   :  { %v36_v19 = vsub.f32 %v34_v16, %v23_v18 }
  0x7f   :  { %v38_v20 = vmax.f32 %v36_v19, 0.0 }
  0x81   :  { %v40_v21 = vmin.f32 %v38_v20, 0.25 }
  0x83   :  { %v48_v22 = vsel %vm44_vm0, %v40_v21, 0.0 }
  0x84   :  { %52 = vst [vmem:[#allocation2 + $0x8] sm:$0xff] %v48_v22 }
  0x85   :  { %65 = dma.vmem_to_hbm [thread:$0]  %s58_s21, 256, %s60_s24, [#allocation3], %s104_s0, %s104_s0, %s105_s25  }
  0x86   :  { %100 = dma.done.wait [#allocation3], 256  }
  0x87   :  { %101 = vsyncadd [#allocation3], 4294967040 }
  0x88   :  { %70 = vsyncpa [#allocation3], 1 }

</bundles_post_ra>
